<compile_context>
chip_gen: v7x
topology: tpu7x:2x2x1
jax: 0.10.0
libtpu: 0.0.40
codegen_flags: <defaults>
</compile_context>

<pallas_src>
import jax
import jax.numpy as jnp
from jax.experimental import pallas as pl
from jax.experimental.pallas import tpu as pltpu


def _sc_satt_kernel(x_ref, pool_ref, w1_ref, b1_ref, w2_ref, b2_ref, o_ref):
    # x_ref   : (rois, TSp*channel)   NCHW-native slab (rois on sublanes,
    #                                  flattened spatial*window on lanes)
    # pool_ref: (CB*channel, CB)      0/1 window-sum matrix (MXU pooling)
    # w1_ref  : (hid, rois)           Linear-1 weight, pre-scaled by 1/channel
    # b1_ref  : (hid, 1)
    # w2_ref  : (rois, hid)           Linear-2 weight
    # b2_ref  : (rois, 1)
    # o_ref   : (rois, TSp)           NCHW-native output slab
    w1 = w1_ref[...]
    b1 = b1_ref[...]
    w2 = w2_ref[...]
    b2 = b2_ref[...]
    pool = pool_ref[...]
    cbc, cb = pool.shape                      # chunk widths (static)
    n_chunks = o_ref.shape[-1] // cb          # static unroll count

    for j in range(n_chunks):
        xj = x_ref[:, j * cbc:(j + 1) * cbc]  # (rois, CB*channel) aligned slice
        if xj.dtype != jnp.float32:
            xj = xj.astype(jnp.float32)
        # Linear-1 before pooling (they commute; 1/channel is baked into w1).
        gj = jnp.dot(w1, xj, preferred_element_type=jnp.float32)        # (hid, CB*channel)
        # Average pool = MXU matmul with the 0/1 window matrix, then bias.
        hj = jnp.dot(gj, pool, preferred_element_type=jnp.float32) + b1  # (hid, CB)
        hj = jnp.maximum(hj, 0.0)                                        # ReLU
        yj = jnp.dot(w2, hj, preferred_element_type=jnp.float32) + b2    # (rois, CB)
        o_ref[:, j * cb:(j + 1) * cb] = jax.nn.sigmoid(yj).astype(o_ref.dtype)


def _spatial_tiling(Sp, rois, channel, vmem_block_budget=1 << 20):
    """Pick (TSp, CB): TSp | Sp pooled positions per grid step, CB | TSp
    positions per in-kernel pooling-matmul chunk (128 in the fast path)."""
    if Sp % 128 == 0:
        CB = 128
        n_total = Sp // CB
        # Cap the f32 input block (rois, TSp*channel) at ~1 MiB per buffer.
        cap = max(1, vmem_block_budget // (rois * channel * CB * 4))
        cap = min(cap, n_total, 16)
        n = max(d for d in range(1, cap + 1) if n_total % d == 0)
        return CB * n, CB
    # Irregular spatial extent: one spatial tile per batch element (full dims
    # satisfy the BlockSpec (8,128) rule); keep the pooling matrix modest.
    CB = max(d for d in range(1, min(Sp, 256) + 1) if Sp % d == 0)
    if Sp // CB > 64:   # divisor-poor sizes: avoid pathological unrolls
        CB = Sp
    return Sp, CB


def sc_satt_forward(x, w1, b1, w2, b2, channel):
    """x: (B, C, H, W) NCHW with C == rois, W % channel == 0.
    w1: (rois//4, rois), b1: (rois//4,), w2: (rois, rois//4), b2: (rois,)."""
    B, C, H, W = x.shape
    rois = C
    hid = w1.shape[0]
    assert W % channel == 0, "AvgPool2d((1, channel)) requires W % channel == 0"
    S = H * W
    Sp = S // channel
    Wp = W // channel

    TSp, CB = _spatial_tiling(Sp, rois, channel)
    TS = TSp * channel
    CBc = CB * channel

    # Metadata-only view of NCHW input; pooling windows are contiguous groups
    # of `channel` elements along the flattened spatial axis.
    xr = x.reshape(B, rois, S)

    # Constant 0/1 pooling matrix (window-sum); the 1/channel mean scale is
    # folded into the Linear-1 weight.
    pool = (jnp.arange(CBc)[:, None] // channel
            == jnp.arange(CB)[None, :]).astype(jnp.float32)     # (CBc, CB)
    w1s = w1.astype(jnp.float32) / channel                      # (hid, rois)
    w2f = w2.astype(jnp.float32)                                # (rois, hid)
    b1r = b1.astype(jnp.float32).reshape(hid, 1)
    b2r = b2.astype(jnp.float32).reshape(rois, 1)

    grid = (B, Sp // TSp)
    itemsize = x.dtype.itemsize
    cost = pl.CostEstimate(
        flops=2 * B * (hid * rois * S + hid * CBc * Sp + rois * hid * Sp),
        transcendentals=B * rois * Sp,
        bytes_accessed=B * rois * S * itemsize + B * rois * Sp * itemsize,
    )

    out = pl.pallas_call(
        _sc_satt_kernel,
        out_shape=jax.ShapeDtypeStruct((B, rois, Sp), x.dtype),
        grid_spec=pltpu.PrefetchScalarGridSpec(
            num_scalar_prefetch=0,
            grid=grid,
            in_specs=[
                pl.BlockSpec((None, rois, TS), lambda b, s: (b, 0, s)),   # x slab
                pl.BlockSpec((CBc, CB), lambda b, s: (0, 0)),             # pool
                pl.BlockSpec((hid, rois), lambda b, s: (0, 0)),           # w1/channel
                pl.BlockSpec((hid, 1), lambda b, s: (0, 0)),              # b1
                pl.BlockSpec((rois, hid), lambda b, s: (0, 0)),           # w2
                pl.BlockSpec((rois, 1), lambda b, s: (0, 0)),             # b2
            ],
            out_specs=pl.BlockSpec((None, rois, TSp), lambda b, s: (b, 0, s)),
        ),
        compiler_params=pltpu.CompilerParams(
            dimension_semantics=("parallel", "parallel")),
        cost_estimate=cost,
    )(xr, pool, w1s, b1r, w2f, b2r)

    # Metadata-only reshape: (B, rois, Sp) is already NCHW order == PyTorch's
    # permute(0,3,1,2) result -> (B, rois, H, W').
    return out.reshape(B, rois, H, Wp)


def _reference(x, w1, b1, w2, b2, channel):
    """Pure-JAX re-statement of the PyTorch forward for verification."""
    B, C, H, W = x.shape
    Wp = W // channel
    p = x.reshape(B, C, H, Wp, channel).mean(axis=-1)        # AvgPool2d((1, channel))
    p = jnp.transpose(p, (0, 2, 3, 1))                       # (B, H, W', C)
    h = jnp.maximum(p @ w1.T + b1, 0.0)
    y = h @ w2.T + b2
    y = jnp.transpose(y, (0, 3, 1, 2))                       # (B, C, H, W')
    return jax.nn.sigmoid(y)


if __name__ == "__main__":
    rois = 16      # == C of the NCHW input (MLP feature dim)
    channel = 4    # pooling window along W
    B, H, W = 2, 16, 16

    key = jax.random.PRNGKey(0)
    kx, k1, k2, k3, k4 = jax.random.split(key, 5)

    # Deterministic parameter init (PyTorch Linear-style uniform bounds).
    bound1 = 1.0 / (rois ** 0.5)
    bound2 = 1.0 / ((rois // 4) ** 0.5)
    w1 = jax.random.uniform(k1, (rois // 4, rois), jnp.float32, -bound1, bound1)
    b1 = jax.random.uniform(k2, (rois // 4,), jnp.float32, -bound1, bound1)
    w2 = jax.random.uniform(k3, (rois, rois // 4), jnp.float32, -bound2, bound2)
    b2 = jax.random.uniform(k4, (rois,), jnp.float32, -bound2, bound2)

    # Input: NCHW, C == rois  ->  (2, 16, 16, 16)
    x = jax.random.normal(kx, (B, rois, H, W), dtype=jnp.float32)

    attn = jax.block_until_ready(sc_satt_forward(x, w1, b1, w2, b2, channel))
    ref = _reference(x, w1, b1, w2, b2, channel)

    assert attn.shape == ref.shape == (B, rois, H, W // channel)
    assert jnp.allclose(attn, ref, atol=1e-5, rtol=1e-5), \
        float(jnp.max(jnp.abs(attn - ref)))
    print("KERNEL_OK")
</pallas_src>

<mosaic_0001>
module attributes {stable_mosaic.version = 11 : i64} {
  func.func @_sc_satt_kernel(%arg0: i32, %arg1: i32, %arg2: memref<1x16x256xf32, #tpu.memory_space<vmem>>, %arg3: memref<256x64xf32, #tpu.memory_space<vmem>>, %arg4: memref<4x16xf32, #tpu.memory_space<vmem>>, %arg5: memref<4x1xf32, #tpu.memory_space<vmem>>, %arg6: memref<16x4xf32, #tpu.memory_space<vmem>>, %arg7: memref<16x1xf32, #tpu.memory_space<vmem>>, %arg8: memref<1x16x64xf32, #tpu.memory_space<vmem>>) attributes {dimension_semantics = [#tpu.dimension_semantics<parallel>, #tpu.dimension_semantics<parallel>], iteration_bounds = array<i64: 2, 1>, scalar_prefetch = 0 : i64, scratch_operands = 0 : i64, tpu.core_type = #tpu.core_type<tc>, window_params = [{transform_indices = @transform_0, window_bounds = array<i64: 1, 16, 256>}, {pipeline_mode = #tpu.pipeline_mode<synchronous>, transform_indices = @transform_1, window_bounds = array<i64: 256, 64>}, {pipeline_mode = #tpu.pipeline_mode<synchronous>, transform_indices = @transform_2, window_bounds = array<i64: 4, 16>}, {pipeline_mode = #tpu.pipeline_mode<synchronous>, transform_indices = @transform_3, window_bounds = array<i64: 4, 1>}, {pipeline_mode = #tpu.pipeline_mode<synchronous>, transform_indices = @transform_4, window_bounds = array<i64: 16, 4>}, {pipeline_mode = #tpu.pipeline_mode<synchronous>, transform_indices = @transform_5, window_bounds = array<i64: 16, 1>}, {transform_indices = @transform_6, window_bounds = array<i64: 1, 16, 64>}]} {
    %c0 = arith.constant 0 : index
    %c0_0 = arith.constant 0 : index
    %0 = vector.load %arg4[%c0, %c0_0] : memref<4x16xf32, #tpu.memory_space<vmem>>, vector<4x16xf32>
    %c0_1 = arith.constant 0 : index
    %c0_2 = arith.constant 0 : index
    %1 = vector.load %arg5[%c0_1, %c0_2] : memref<4x1xf32, #tpu.memory_space<vmem>>, vector<4x1xf32>
    %c0_3 = arith.constant 0 : index
    %c0_4 = arith.constant 0 : index
    %2 = vector.load %arg6[%c0_3, %c0_4] : memref<16x4xf32, #tpu.memory_space<vmem>>, vector<16x4xf32>
    %c0_5 = arith.constant 0 : index
    %c0_6 = arith.constant 0 : index
    %3 = vector.load %arg7[%c0_5, %c0_6] : memref<16x1xf32, #tpu.memory_space<vmem>>, vector<16x1xf32>
    %c0_7 = arith.constant 0 : index
    %c0_8 = arith.constant 0 : index
    %4 = vector.load %arg3[%c0_7, %c0_8] : memref<256x64xf32, #tpu.memory_space<vmem>>, vector<256x64xf32>
    %c0_9 = arith.constant 0 : index
    %c0_10 = arith.constant 0 : index
    %c0_11 = arith.constant 0 : index
    %5 = vector.load %arg2[%c0_9, %c0_10, %c0_11] : memref<1x16x256xf32, #tpu.memory_space<vmem>>, vector<1x16x256xf32>
    %6 = vector.shape_cast %5 : vector<1x16x256xf32> to vector<16x256xf32>
    %cst = arith.constant dense<0.000000e+00> : vector<4x256xf32>
    %7 = tpu.matmul %0, %6, %cst {dimension_numbers = #tpu.dot_dimension_numbers<[1], [0], [0], [1], [0, 0, 1, 1], [], []>} : vector<4x16xf32>, vector<16x256xf32>, vector<4x256xf32> -> vector<4x256xf32>
    %cst_12 = arith.constant dense<0.000000e+00> : vector<4x64xf32>
    %8 = tpu.matmul %7, %4, %cst_12 {dimension_numbers = #tpu.dot_dimension_numbers<[1], [0], [0], [1], [0, 0, 1, 1], [], []>} : vector<4x256xf32>, vector<256x64xf32>, vector<4x64xf32> -> vector<4x64xf32>
    %9 = vector.broadcast %1 : vector<4x1xf32> to vector<4x64xf32>
    %10 = arith.addf %8, %9 : vector<4x64xf32>
    %cst_13 = arith.constant 0.000000e+00 : f32
    %11 = vector.broadcast %cst_13 : f32 to vector<4x64xf32>
    %12 = arith.maximumf %10, %11 : vector<4x64xf32>
    %cst_14 = arith.constant dense<0.000000e+00> : vector<16x64xf32>
    %13 = tpu.matmul %2, %12, %cst_14 {dimension_numbers = #tpu.dot_dimension_numbers<[1], [0], [0], [1], [0, 0, 1, 1], [], []>} : vector<16x4xf32>, vector<4x64xf32>, vector<16x64xf32> -> vector<16x64xf32>
    %14 = vector.broadcast %3 : vector<16x1xf32> to vector<16x64xf32>
    %15 = arith.addf %13, %14 : vector<16x64xf32>
    %16 = arith.negf %15 : vector<16x64xf32>
    %17 = math.exp %16 : vector<16x64xf32>
    %cst_15 = arith.constant 1.000000e+00 : f32
    %18 = vector.broadcast %cst_15 : f32 to vector<16x64xf32>
    %19 = arith.addf %18, %17 : vector<16x64xf32>
    %20 = arith.divf %18, %19 : vector<16x64xf32>
    %c0_16 = arith.constant 0 : index
    %c0_17 = arith.constant 0 : index
    %c0_18 = arith.constant 0 : index
    %21 = vector.load %arg8[%c0_16, %c0_17, %c0_18] : memref<1x16x64xf32, #tpu.memory_space<vmem>>, vector<1x16x64xf32>
    %22 = vector.shape_cast %21 : vector<1x16x64xf32> to vector<16x64xf32>
    %23 = vector.shape_cast %20 : vector<16x64xf32> to vector<1x16x64xf32>
    tpu.vector_store %arg8[%c0_16, %c0_17, %c0_18], %23 {strides = array<i32>} : memref<1x16x64xf32, #tpu.memory_space<vmem>>, vector<1x16x64xf32>,
    return
  }
  func.func @transform_0(%arg0: i32, %arg1: i32) -> (i32, i32, i32) {
    %c0_i32 = arith.constant 0 : i32
    %c0_i32_0 = arith.constant 0 : i32
    return %arg0, %c0_i32, %arg1 : i32, i32, i32
  }
  func.func @transform_1(%arg0: i32, %arg1: i32) -> (i32, i32) {
    %c0_i32 = arith.constant 0 : i32
    %c0_i32_0 = arith.constant 0 : i32
    %c0_i32_1 = arith.constant 0 : i32
    return %c0_i32, %c0_i32_0 : i32, i32
  }
  func.func @transform_2(%arg0: i32, %arg1: i32) -> (i32, i32) {
    %c0_i32 = arith.constant 0 : i32
    %c0_i32_0 = arith.constant 0 : i32
    %c0_i32_1 = arith.constant 0 : i32
    return %c0_i32, %c0_i32_0 : i32, i32
  }
  func.func @transform_3(%arg0: i32, %arg1: i32) -> (i32, i32) {
    %c0_i32 = arith.constant 0 : i32
    %c0_i32_0 = arith.constant 0 : i32
    %c0_i32_1 = arith.constant 0 : i32
    return %c0_i32, %c0_i32_0 : i32, i32
  }
  func.func @transform_4(%arg0: i32, %arg1: i32) -> (i32, i32) {
    %c0_i32 = arith.constant 0 : i32
    %c0_i32_0 = arith.constant 0 : i32
    %c0_i32_1 = arith.constant 0 : i32
    return %c0_i32, %c0_i32_0 : i32, i32
  }
  func.func @transform_5(%arg0: i32, %arg1: i32) -> (i32, i32) {
    %c0_i32 = arith.constant 0 : i32
    %c0_i32_0 = arith.constant 0 : i32
    %c0_i32_1 = arith.constant 0 : i32
    return %c0_i32, %c0_i32_0 : i32, i32
  }
  func.func @transform_6(%arg0: i32, %arg1: i32) -> (i32, i32, i32) {
    %c0_i32 = arith.constant 0 : i32
    %c0_i32_0 = arith.constant 0 : i32
    return %arg0, %c0_i32, %arg1 : i32, i32, i32
  }
}

</mosaic_0001>

<bundles_post_ra>
// kernel: tpu_custom_call.1
= control target key start
LH: loop header
LB: loop body
LE: loop exit
PB: predicated region body
PF: predicated region fallthrough
CT: control target
= control target key end

     0   :  { %11 = vsyncpa [#allocation3], 0  ;;  %s1195_s0 = inlined_call_operand.vmem [shape: f32[2,16,256], index: 0, kind: input, shape index: {}]   ;;  %s1196_s1 = inlined_call_operand.vmem [shape: f32[256,64], index: 1, kind: input, shape index: {}]   ;;  %s1197_s2 = inlined_call_operand.vmem [shape: f32[4,16], index: 2, kind: input, shape index: {}]   ;;  %s1198_s3 = inlined_call_operand.vmem [shape: f32[4,1], index: 3, kind: input, shape index: {}]   ;;  %s1199_s4 = inlined_call_operand.vmem [shape: f32[16,4], index: 4, kind: input, shape index: {}]   ;;  %s1200_s5 = inlined_call_operand.vmem [shape: f32[16,1], index: 5, kind: input, shape index: {}]   ;;  %s1201_s6 = inlined_call_operand.hbm [shape: f32[2,16,64], index: 6, kind: output, shape index: {}]  }
   0x1   :  { %13 = vsyncpa [#allocation3 + $0x1], 0  ;;  %s966_s21 = smov 0   ;;  %s968_s22 = smov 0  }
   0x2   :  { %s970_s23 = smov 0   ;;  %s972_s24 = smov 0  }
   0x3   :  { %s974_s25 = smov 0   ;;  %s976_s26 = smov 0  }
   0x4 LB: > { %s677_s27 = sadd.s32 4294967295, %s924_s26   ;;  %s678_s28 = sadd.s32 4294967294, %s924_s26   ;;  %s924_s26 = sphi %s976_s26, %s19_s26   ;;  %s920_s25 = sphi %s974_s25, %s1208_s25   ;;  %s916_s24 = sphi %s972_s24, %s1207_s24   ;;  %s912_s23 = sphi %s970_s23, %s1206_s23   ;;  %s908_s22 = sphi %s968_s22, %s1205_s22   ;;  %s904_s21 = sphi %s966_s21, %s1204_s21  }
   0x5   : > { %s31_s29 = sadd.s32 1, %s920_s25  ;;  %s173_s30 = sadd.s32 1, %s912_s23 }
   0x6   : > { %p33_p0 = scmp.ge.s32.totalorder %s31_s29, 2  ;;  %p183_p1 = scmp.ne.s32.totalorder %s912_s23, %s908_s22 }
   0x7   : > { %p184_p2 = scmp.eq.s32.totalorder %s677_s27, 1  ;;  %p189_p3 = scmp.ne.s32.totalorder %s908_s22, %s904_s21 }
   0x8   : > { %s1210_s29 = smov (%p33_p0, %s31_s29), 0  ;;  %p190_p5 = scmp.eq.s32.totalorder %s678_s28, 1 }
   0x9   : > { %p1006_p4 = por %p184_p2, %p183_p1  ;;  %s168_s8 = ssub.s32 %s920_s25, %s1210_s29 }
   0xa   : > { %p681_p6 = scmp.ge.s32.totalorder %s924_s26, 1  ;;  %p171_p7 = scmp.eq.s32.totalorder %s168_s8, 0 }
   0xb   : > { %p1013_p8 = por %p190_p5, %p189_p3  ;;  %p236_p9 = scmp.lt.s32.totalorder %s924_s26, 3 }
   0xc   : > { %s1019_s10 = scalar_select %p171_p7, %s912_s23, %s173_s30  }
   0xd   : > { %p237_p10 = pnand %p681_p6, %p236_p9 }
   0xe   : > { %p271_p11 = scmp.lt.s32.totalorder (!%p237_p10), %s916_s24, 1  ;;  %v302_v0 = vld [vmem:[%s1196_s1 + $0x80] sm:$0xff] (!%p237_p10)  ;;  %v926_v1 = vmov (!%p237_p10), 0.0   ;;  %v303_v2 = vld [vmem:[%s1196_s1 + $0x88] sm:$0xff] (!%p237_p10)  ;;  %v304_v7 = vld [vmem:[%s1196_s1 + $0x90] sm:$0xff] (!%p237_p10)  ;;  %vm322_vm0 = vcmask (!%p237_p10), 130048  }
   0xf   : > { %240 = sbr.rel (%p237_p10) target bundleno = 724 (0x2d4), region = 44  ;;  %390 = vmatprep.mubr.f32.mxu0 (!%p237_p10), %v926_v1  ;;  %v286_v3 = vld [vmem:[%s1196_s1] sm:$0xff] (!%p237_p10)  ;;  %v287_v4 = vld [vmem:[%s1196_s1 + $0x8] sm:$0xff] (!%p237_p10)  ;;  %v745_v5 = vpack.c.bf16 (!%p237_p10), %v303_v2, %v302_v0  ;;  %v305_v8 = vld [vmem:[%s1196_s1 + $0x98] sm:$0xff] (!%p237_p10)  ;;  %v927_v57 = vmov (!%p237_p10), 0   ;;  %vm483_vm1 = vcmask (!%p237_p10), 31744  }
  0x10   : > { %v747_v6 = vpack.c.bf16 (!%p237_p10), %v287_v4, %v286_v3  ;;  %v288_v9 = vld [vmem:[%s1196_s1 + $0x10] sm:$0xff] (!%p237_p10)  ;;  %v749_v10 = vpack.c.bf16 (!%p237_p10), %v305_v8, %v304_v7  ;;  %v289_v11 = vld [vmem:[%s1196_s1 + $0x18] sm:$0xff] (!%p237_p10)  ;;  %v306_v12 = vld [vmem:[%s1196_s1 + $0xa0] sm:$0xff] (!%p237_p10)  ;;  %836 = vset.pattern.permute.xlu0 (!%p237_p10), %v927_v57  ;;  %837 = vset.pattern.permute.xlu1 (!%p237_p10), %v927_v57  ;;  %vm490_vm2 = vcmask (!%p237_p10), 1043456   ;;  %s267_s30 = sand.u32 (!%p237_p10), 1, %s908_s22   ;;  %s697_s11 = sshll.u32 (!%p237_p10), %s916_s24, 8 }
  0x11   : > { %v307_v13 = vld [vmem:[%s1196_s1 + $0xa8] sm:$0xff] (!%p237_p10)  ;;  %746 = vmatprep.subr.bf16.mxu1 (!%p237_p10), %v745_v5  ;;  %v751_v14 = vpack.c.bf16 (!%p237_p10), %v289_v11, %v288_v9  ;;  %v290_v15 = vld [vmem:[%s1196_s1 + $0x20] sm:$0xff] (!%p237_p10)  ;;  %v308_v23 = vld [vmem:[%s1196_s1 + $0xb0] sm:$0xff] (!%p237_p10)  ;;  %s682_s8 = sshll.u32 (!%p237_p10), %s267_s30, 4  ;;  %vm581_vm3 = vcmask (!%p237_p10), 523264   ;;  %s1145_s15 = scalar_lea.hbm (!%p237_p10), %s1201_s6, %s697_s11 }
  0x12   : > { %748 = vmatpush3.bf16.msra.mxu1 (!%p237_p10), %v747_v6  ;;  %v291_v16 = vld [vmem:[%s1196_s1 + $0x28] sm:$0xff] (!%p237_p10)  ;;  %v753_v20 = vpack.c.bf16 (!%p237_p10), %v307_v13, %v306_v12  ;;  %v309_v24 = vld [vmem:[%s1196_s1 + $0xb8] sm:$0xff] (!%p237_p10)  ;;  %v280_v27 = vld [vmem:[%s1197_s2] sm:$0xf] (!%p237_p10)  ;;  %s269_s12 = scalar_lea.vmem (!%p237_p10), [#allocation2], %s682_s8  ;;  %s1149_s16 = scalar_lea.sflag (!%p237_p10), [#allocation3], %s267_s30 }
  0x13   : > { %750 = vmatprep.subr.bf16.mxu1 (!%p237_p10), %v749_v10  ;;  %v755_v26 = vpack.c.bf16 (!%p237_p10), %v291_v16, %v290_v15  ;;  %v757_v28 = vpack.c.bf16 (!%p237_p10), %v309_v24, %v308_v23  ;;  %v292_v29 = vld [vmem:[%s1196_s1 + $0x30] sm:$0xff] (!%p237_p10)  ;;  %v293_v30 = vld [vmem:[%s1196_s1 + $0x38] sm:$0xff] (!%p237_p10)  ;;  %v310_v31 = vld [vmem:[%s1196_s1 + $0xc0] sm:$0xff] (!%p237_p10)  ;;  %s928_s17 = smov (!%p237_p10), [#allocation2]  }
  0x14   : > { %v311_v32 = vld [vmem:[%s1196_s1 + $0xc8] sm:$0xff] (!%p237_p10)  ;;  %v759_v33 = vpack.c.bf16 (!%p237_p10), %v293_v30, %v292_v29  ;;  %v294_v35 = vld [vmem:[%s1196_s1 + $0x40] sm:$0xff] (!%p237_p10)  ;;  %v312_v37 = vld [vmem:[%s1196_s1 + $0xd0] sm:$0xff] (!%p237_p10) }
  0x15   : > { %v761_v34 = vpack.c.bf16 (!%p237_p10), %v311_v32, %v310_v31  ;;  %v295_v36 = vld [vmem:[%s1196_s1 + $0x48] sm:$0xff] (!%p237_p10)  ;;  %v313_v38 = vld [vmem:[%s1196_s1 + $0xd8] sm:$0xff] (!%p237_p10)  ;;  %v296_v41 = vld [vmem:[%s1196_s1 + $0x50] sm:$0xff] (!%p237_p10) }
  0x16   : > { %s272_s19 = scalar_select %p271_p11, %s916_s24, 1  ;;  %752 = vmatpush3.bf16.msra.mxu1 %v751_v14  ;;  %v763_v39 = vpack.c.bf16 %v295_v36, %v294_v35  ;;  %v765_v40 = vpack.c.bf16 %v313_v38, %v312_v37  ;;  %v297_v42 = vld [vmem:[%s1196_s1 + $0x58] sm:$0xff]  ;;  %v314_v43 = vld [vmem:[%s1196_s1 + $0xe0] sm:$0xff]  ;;  %v315_v44 = vld [vmem:[%s1196_s1 + $0xe8] sm:$0xff] }
  0x17   : > { %754 = vmatprep.subr.bf16.mxu1 %v753_v20  ;;  %v767_v45 = vpack.c.bf16 %v297_v42, %v296_v41  ;;  %v769_v46 = vpack.c.bf16 %v315_v44, %v314_v43  ;;  %v298_v47 = vld [vmem:[%s1196_s1 + $0x60] sm:$0xff]  ;;  %v299_v48 = vld [vmem:[%s1196_s1 + $0x68] sm:$0xff]  ;;  %v316_v49 = vld [vmem:[%s1196_s1 + $0xf0] sm:$0xff] }
  0x18   : > { %s696_s18 = sshll.u32 %s272_s19, 5  ;;  %v317_v50 = vld [vmem:[%s1196_s1 + $0xf8] sm:$0xff]  ;;  %v771_v51 = vpack.c.bf16 %v299_v48, %v298_v47  ;;  %v300_v53 = vld [vmem:[%s1196_s1 + $0x70] sm:$0xff]  ;;  %v281_v56 = vld [vmem:[%s1198_s3] sm:$0xf]  ;;  %s599_s19 = sshll.u32 %s269_s12, 4  ;;  %s1147_s19 = int_to_ptr.vmem [resolvable:$true] %s599_s19 }
  0x19   : > { %s278_s28 = scalar_lea.vmem %s1195_s0, %s696_s18  ;;  %v773_v52 = vpack.c.bf16 %v317_v50, %v316_v49  ;;  %v301_v54 = vld [vmem:[%s1196_s1 + $0x78] sm:$0xff]  ;;  %399 = vperm.xlu0 %836, %v281_v56   ;;  %v284_v58 = vld [vmem:[%s1200_s5] sm:$0xff]  ;;  %v285_v62 = vld [vmem:[%s1200_s5 + $0x8] sm:$0xff]  ;;  %s846_s24 = scalar_lea.vmem %s1147_s19, 256 }
  0x1a   : > { %v319_v17 = vld [vmem:[%s278_s28 + $0x8] sm:$0xff]  ;;  %v321_v18 = vld [vmem:[%s278_s28 + $0x18] sm:$0xff]  ;;  %v318_v19 = vld [vmem:[%s278_s28] sm:$0xff]  ;;  %756 = vmatpush3.bf16.msra.mxu1 %v755_v26  ;;  %v775_v55 = vpack.c.bf16 %v301_v54, %v300_v53  ;;  %480 = vperm.xlu1 %837, %v285_v62   ;;  %p847_p12 = scmp.ne.s32.totalorder %s1147_s19, %s846_s24  ;;  %s850_s18 = sshll.u32 %s928_s17, 4  ;;  %s851_s18 = int_to_ptr.vmem [resolvable:$false] %s850_s18 }
  0x1b   : > { %v741_v21 = vpack.c.bf16 %v321_v18, %v319_v17  ;;  %v320_v22 = vld [vmem:[%s278_s28 + $0x10] sm:$0xff]  ;;  %758 = vmatprep.subr.bf16.mxu1 %v757_v28  ;;  %v282_v61 = vld [vmem:[%s1199_s4] sm:$0xff]  ;;  %v283_v5 = vld [vmem:[%s1199_s4 + $0x8] sm:$0xff]  ;;  %s852_s20 = scalar_lea.vmem %s851_s18, 512  ;;  %p853_p1 = scmp.lt.s32.totalorder %s1147_s19, %s851_s18 }
  0x1c   : > { %v743_v25 = vpack.c.bf16 %v320_v22, %v318_v19  ;;  %p848_p13 = pnand %p847_p12, %p1006_p4  ;;  %p854_p2 = scmp.lt.s32.totalorder %s852_s20, %s846_s24 }
  0x1d   : > { %742 = vmatprep.subr.bf16.mxu0 %v741_v21  ;;  %475 = vperm.xlu0 %836, %v284_v58  }
  0x1e   : > { %744 = vmatpush1.bf16.msra.mxu0 %v743_v25  ;;  %760 = vmatpush3.bf16.msra.mxu1 %v759_v33  ;;  %p849_p0 = pneg %p848_p13  ;;  %p855_p3 = por %p854_p2, %p853_p1 }
  0x1f   : > { %762 = vmatprep.subr.bf16.mxu1 %v761_v34 }
  0x20   : > { %p856_p5 = pnand %p855_p3, %p849_p0 }
  0x21   : > { %685 = vmatmul.mubr.msk.f32.vlgmr.msra.gmra.mrb[0].mxu0 %vm322_vm0, %v280_v27 }
  0x22   : > { %764 = vmatpush3.bf16.msra.mxu1 %v763_v39  ;;  %738 = vmatprep.mubr.msk.f32.mxu0 %vm483_vm1, %v282_v61 }
  0x23   : > { %766 = vmatprep.subr.bf16.mxu1 %v765_v40 }
  0x26   : > { %768 = vmatpush3.bf16.msra.mxu1 %v767_v45 }
  0x27   : > { %770 = vmatprep.subr.bf16.mxu1 %v769_v46 }
  0x2a   : > { %772 = vmatpush3.bf16.msra.mxu1 %v771_v51 }
  0x2b   : > { %774 = vmatprep.subr.bf16.mxu1 %v773_v52 }
  0x2e   : > { %776 = vmatpush3.bf16.msra.mxu1 %v775_v55 }
  0x98   : > { %v400_v2 = vpop.permute.xlu0 %399 }
  0x99   : > { %v481_v6 = vpop.permute.xlu1 %480 }
  0x9c   : > { %v476_v8 = vpop.permute.xlu0 %475 }
  0xf4   : > { %v392_v59 = vpop.f32.mrb[0].mxu0 }
  0xf5   : > { %v394_v60 = vpop.f32.mrb[1].mxu0 }
  0xf6   : > { %466 = vmatprep.mubr.f32.mxu1 %v394_v60 }
  0xf7   : > { %467 = vmatmul.mubr.f32.vlgmr.msra.gmra.mrb[0].mxu1 %v392_v59 }
 0x1ca   : > { %v730_v63 = vpop.f32.mrb[0].mxu1 }
 0x1cb   : > { %v731_v0 = vpop.f32.mrb[1].mxu1 }
 0x1cc   : > { %v732_v1 = vadd.f32 %v731_v0, %v730_v63 }
 0x1ce   : > { %v469_v3 = vadd.f32 %v732_v1, %v400_v2 }
 0x1d0   : > { %v472_v4 = vmax.f32 %v469_v3, 0.0 }
 0x1d2   : > { %736 = vmatprep.subr.msk.mxu0 %vm490_vm2, %v472_v4 }
 0x1d3   : > { %737 = vmatpush3.msk.msra.mxu0 %vm490_vm2, %v472_v4 }
 0x1d4   : > { %739 = vmatmul.mubr.msk.f32.vlgmr.msra.gmra.mrb[2].mxu0 %vm483_vm1, %v283_v5 }
 0x2a7   : > { %v740_v7 = vpop.f32.mrb[2].mxu0 }
 0x2a8   : > { %v560_v9 = vpop.f32.mrb[3].mxu0  ;;  %v566_v10 = vadd.f32 %v740_v7, %v481_v6 }
 0x2a9   : > { %v561_v11 = vadd.f32 %v560_v9, %v476_v8 }
 0x2aa   : > { %v690_v12 = vmul.f32 -1.442695, %v566_v10 }
 0x2ab   : > { %v689_v13 = vmul.f32 -1.442695, %v561_v11 }
 0x2ac   : > { %838 = vpow2.f32 %v690_v12 }
 0x2ad   : > { %840 = vpow2.f32 %v689_v13 }
 0x2b6   : > { %v839_v14 = vpop.eup %838 }
 0x2b7   : > { %v841_v15 = vpop.eup %840  ;;  %v576_v16 = vadd.f32 1.0, %v839_v14 }
 0x2b8   : > { %v575_v17 = vadd.f32 1.0, %v841_v15 }
 0x2b9   : > { %842 = vrcp.f32 %v576_v16 }
 0x2ba   : > { %844 = vrcp.f32 %v575_v17 }
 0x2c3   : > { %v843_v18 = vpop.eup %842 }
 0x2c4   : > { %v845_v19 = vpop.eup %844  ;;  %583 = vst.msk [vmem:[%s269_s12 + $0x8] sm:$0xff] %vm581_vm3, %v843_v18 }
 0x2c5   : > { %582 = vst.msk [vmem:[%s269_s12] sm:$0xff] %vm581_vm3, %v845_v19 }
 0x2c6   : > { %859 = shalt.err (!%p856_p5)
}
 0x2c7   : > { %s860_s27 = scalar_lea.hbm %s1145_s15, 256  ;;  %s864_s8 = scalar_lea.hbm %s1201_s6, 512 }
 0x2c8   : > { %p861_p6 = scmp.ne.s32.totalorder %s1145_s15, %s860_s27  ;;  %p865_p10 = scmp.lt.u32.totalorder %s1145_s15, %s1201_s6 }
 0x2c9   : > { %p866_p11 = scmp.lt.u32.totalorder %s864_s8, %s860_s27  ;;  %p868_p13 = scmp.lt.u32.totalorder %s860_s27, %s1145_s15 }
 0x2ca   : > { %p862_p7 = pnand %p861_p6, %p1006_p4 }
 0x2cb   : > { %p867_p12 = por %p866_p11, %p865_p10 }
 0x2cc   : > { %p863_p9 = pneg %p862_p7 }
 0x2cd   : > { %p869_p0 = por %p868_p13, %p867_p12 }
 0x2cf   : > { %p870_p1 = pnand %p869_p0, %p863_p9 }
 0x2d1   : > { %873 = shalt.err (!%p870_p1)
}
 0x2d2   : > { %s929_s13 = smov 128   ;;  %s930_s14 = smov 8  }
 0x2d3   : > { %777 = dma.vmem_to_hbm [thread:$0]  (%p1006_p4), %s1147_s19, 256, %s1145_s15, %s1149_s16, %s929_s13, %s929_s13, %s930_s14  }
 0x2d4 PF: > { %p783_p2 = scmp.ge.s32.totalorder %s924_s26, 2  ;;  %s614_s24 = sand.u32 1, %s904_s21  }
 0x2d5   : > { %s615_s17 = scalar_lea.sflag [#allocation3], %s614_s24 }
 0x2d6   : > { %p780_p3 = pnand %p783_p2, %p1013_p8 }
 0x2d8   : > { %899 = dma.done.wait (!%p780_p3), %s615_s17, 256  }
 0x2d9   : > { %901 = vsyncadd (!%p780_p3), %s615_s17, 4294967040  ;;  %s19_s26 = sadd.s32 1, %s924_s26   ;;  %s1204_s21 = smov %s908_s22 }
 0x2da   : > { %p16_p5 = scmp.ge.s32.totalorder %s19_s26, 4   ;;  %s1205_s22 = smov %s912_s23 }
 0x2db   : > { %s1206_s23 = smov %s1019_s10  ;;  %s1207_s24 = smov %s920_s25 }
 0x2dc   : > { %s1208_s25 = smov %s1210_s29  ;;  %18 = sbr.rel (!%p16_p5) target bundleno = 4 (0x4), region = 79 }
 0x2e3   :  { %620 = vsyncpa [#allocation3], 1 }
 0x2e4   :  { %622 = vsyncpa [#allocation3 + $0x1], 1 }

</bundles_post_ra>
